<compile_context>
chip_gen: v5e
topology: v5e:2x2
jax: 0.10.0
libtpu: 0.0.40
codegen_flags: <defaults>
</compile_context>

<pallas_src>
import functools

import jax
import jax.numpy as jnp
from jax.experimental import pallas as pl
from jax.experimental.pallas import tpu as pltpu


# ---------------------------------------------------------------------------
# Fused kernel: one-pass batch stats + class-conditional affine (one channel block per grid step)
# ---------------------------------------------------------------------------
def _cbn_kernel(y_ref, x_ref, emb_ref, o_ref, *, eps, inv_count):
    # y_ref  : SMEM (B,)                int32  class index per batch element (scalar prefetch)
    # x_ref  : VMEM (B, c_blk, HWp)     model dtype
    # emb_ref: VMEM (NC, c_blk, 2)      f32    [..., 0] = gamma, [..., 1] = beta (channel slice)
    # o_ref  : VMEM (B, c_blk, HWp)     model dtype
    B = x_ref.shape[0]

    # --- one-pass per-channel statistics: accumulate sum and sum-of-squares in f32 ---
    # TODO(synk): switch the Python b-loop to lax.fori_loop(..., unroll=True) if B grows beyond ~4.
    x0 = x_ref[0].astype(jnp.float32)                       # (c_blk, HWp) streamed from VMEM
    s = x0
    ssq = x0 * x0
    for b in range(1, B):
        xb = x_ref[b].astype(jnp.float32)
        s = s + xb
        ssq = ssq + xb * xb
    mean_c = jnp.sum(s, axis=-1, keepdims=True) * inv_count                   # (c_blk, 1)
    var_c = jnp.sum(ssq, axis=-1, keepdims=True) * inv_count - mean_c * mean_c
    var_c = jnp.maximum(var_c, 0.0)                          # guard cancellation -> tiny negatives
    inv_std = jax.lax.rsqrt(var_c + eps)                                      # (c_blk, 1)

    # --- class-conditional affine: per-batch (gamma, beta) gather, folded scale/shift, one FMA ---
    for b in range(B):
        row = emb_ref[y_ref[b]]                              # (c_blk, 2) dynamic leading-axis load
        scale = row[:, 0:1] * inv_std                        # gamma / sqrt(var + eps)
        shift = row[:, 1:2] - mean_c * scale                 # beta  - mean * scale
        o_ref[b] = (x_ref[b].astype(jnp.float32) * scale + shift).astype(o_ref.dtype)


# ---------------------------------------------------------------------------
# Channel-block sizing: multiple of 8, divides C, double-buffered in+out blocks fit the budget.
# ---------------------------------------------------------------------------
def _choose_c_block(B, C, HWp, itemsize, budget_bytes):
    if C % 8 != 0:
        # Block second-to-last dim must be a multiple of 8 or equal the full dim -> use full C.
        return C
    per_chan_bytes = B * HWp * itemsize
    max_c = int(budget_bytes // (4 * per_chan_bytes))        # 2 bufs (in) + 2 bufs (out)
    max_c = (max_c // 8) * 8
    if max_c < 8:
        max_c = 8
    c_blk = min(C, max_c)
    while C % c_blk != 0:                                    # avoid partial channel blocks
        c_blk -= 8
    return max(c_blk, 8)


# ---------------------------------------------------------------------------
# Wrapper
# ---------------------------------------------------------------------------
def conditional_batchnorm2d(x, y, embed_weight, *, eps=1e-5,
                            vmem_budget_bytes=12 * 1024 * 1024):
    B, C, H, W = x.shape
    num_classes, two_c = embed_weight.shape
    assert two_c == 2 * C, "embedding width must be 2 * num_features"
    HW = H * W

    x3 = x.reshape(B, C, HW)                                 # free contiguous reshape
    # Keep the lane axis a multiple of 128 (unmasked vst). Zero pad does not perturb sum / sumsq;
    # mean/var use the true count; padded output columns are sliced off below.
    HWp = -(-HW // 128) * 128
    if HWp != HW:
        x3 = jnp.pad(x3, ((0, 0), (0, 0), (0, HWp - HW)))

    # One-time tiny parameter relayout: (NC, 2C) -> (NC, C, 2) so the in-kernel gather returns a
    # (c_blk, 1)-broadcastable tile with no in-kernel transpose. Stats math is f32.
    table = jnp.stack([embed_weight[:, :C], embed_weight[:, C:]], axis=-1).astype(jnp.float32)

    itemsize = jnp.dtype(x.dtype).itemsize
    c_blk = _choose_c_block(B, C, HWp, itemsize, vmem_budget_bytes)
    assert C % c_blk == 0
    grid = (C // c_blk,)

    kernel = functools.partial(_cbn_kernel, eps=eps, inv_count=1.0 / float(B * HW))

    out = pl.pallas_call(
        kernel,
        out_shape=jax.ShapeDtypeStruct((B, C, HWp), x.dtype),
        grid_spec=pltpu.PrefetchScalarGridSpec(
            num_scalar_prefetch=1,                           # y -> SMEM, visible to index_maps too
            grid=grid,
            in_specs=[
                pl.BlockSpec((B, c_blk, HWp), lambda i, y_pf: (0, i, 0)),
                pl.BlockSpec((num_classes, c_blk, 2), lambda i, y_pf: (0, i, 0)),
            ],
            out_specs=pl.BlockSpec((B, c_blk, HWp), lambda i, y_pf: (0, i, 0)),
        ),
        compiler_params=pltpu.CompilerParams(
            dimension_semantics=("parallel",),               # channel blocks are independent
        ),
        cost_estimate=pl.CostEstimate(
            flops=5 * B * C * HW,
            transcendentals=C,
            bytes_accessed=2 * B * C * HW * itemsize,
        ),
    )(y.astype(jnp.int32), x3, table)

    return out[:, :, :HW].reshape(B, C, H, W)


# ---------------------------------------------------------------------------
# Pure-JAX reference (for correctness check)
# ---------------------------------------------------------------------------
def _reference(x, y, embed_weight, eps=1e-5):
    B, C, H, W = x.shape
    mean = jnp.mean(x, axis=(0, 2, 3), keepdims=True)
    var = jnp.mean((x - mean) ** 2, axis=(0, 2, 3), keepdims=True)   # biased, as PyTorch BN norm
    out = (x - mean) * jax.lax.rsqrt(var + eps)
    gb = embed_weight[y]                                             # (B, 2C)
    gamma = gb[:, :C].reshape(B, C, 1, 1)
    beta = gb[:, C:].reshape(B, C, 1, 1)
    return gamma * out + beta


if __name__ == "__main__":
    B, C, H, W = 2, 4, 16, 16
    num_classes = 10

    key = jax.random.PRNGKey(0)
    kx, ky, ke = jax.random.split(key, 3)

    x = jax.random.normal(kx, (B, C, H, W), jnp.float32)
    y = jax.random.randint(ky, (B,), 0, num_classes, jnp.int32)

    # Embedding init mirrors the PyTorch module: gamma ~ N(1, 0.02), beta = 0.
    gamma_init = 1.0 + 0.02 * jax.random.normal(ke, (num_classes, C), jnp.float32)
    beta_init = jnp.zeros((num_classes, C), jnp.float32)
    embed_weight = jnp.concatenate([gamma_init, beta_init], axis=-1)  # (num_classes, 2C)

    out = conditional_batchnorm2d(x, y, embed_weight)
    out = jax.block_until_ready(out)

    ref = _reference(x, y, embed_weight)
    assert out.shape == (B, C, H, W)
    assert jnp.allclose(out, ref, atol=1e-4, rtol=1e-4), "Pallas output mismatch vs JAX reference"

    print("KERNEL_OK")
</pallas_src>

<mosaic_0001>
module attributes {stable_mosaic.version = 11 : i64} {
  func.func @_cbn_kernel(%arg0: i32, %arg1: memref<2xi32, #tpu.memory_space<smem>>, %arg2: memref<2x4x256xf32, #tpu.memory_space<vmem>>, %arg3: memref<10x4x2xf32, #tpu.memory_space<vmem>>, %arg4: memref<2x4x256xf32, #tpu.memory_space<vmem>>) attributes {dimension_semantics = [#tpu.dimension_semantics<parallel>], iteration_bounds = array<i64: 1>, scalar_prefetch = 1 : i64, scratch_operands = 0 : i64, tpu.core_type = #tpu.core_type<tc>, window_params = [{transform_indices = @transform_0, window_bounds = array<i64: 2, 4, 256>}, {transform_indices = @transform_1, window_bounds = array<i64: 10, 4, 2>}, {transform_indices = @transform_2, window_bounds = array<i64: 2, 4, 256>}]} {
    %c0 = arith.constant 0 : index
    %c0_0 = arith.constant 0 : index
    %c0_1 = arith.constant 0 : index
    %0 = vector.load %arg2[%c0, %c0_0, %c0_1] : memref<2x4x256xf32, #tpu.memory_space<vmem>>, vector<1x4x256xf32>
    %1 = vector.shape_cast %0 : vector<1x4x256xf32> to vector<4x256xf32>
    %2 = arith.mulf %1, %1 : vector<4x256xf32>
    %c1 = arith.constant 1 : index
    %c0_2 = arith.constant 0 : index
    %c0_3 = arith.constant 0 : index
    %3 = vector.load %arg2[%c1, %c0_2, %c0_3] : memref<2x4x256xf32, #tpu.memory_space<vmem>>, vector<1x4x256xf32>
    %4 = vector.shape_cast %3 : vector<1x4x256xf32> to vector<4x256xf32>
    %5 = arith.addf %1, %4 : vector<4x256xf32>
    %6 = arith.mulf %4, %4 : vector<4x256xf32>
    %7 = arith.addf %2, %6 : vector<4x256xf32>
    %cst = arith.constant dense<0.000000e+00> : vector<4xf32>
    %8 = vector.multi_reduction <add>, %5, %cst [1] : vector<4x256xf32> to vector<4xf32>
    %9 = vector.shape_cast %8 : vector<4xf32> to vector<4x1xf32>
    %cst_4 = arith.constant 0.001953125 : f32
    %10 = vector.broadcast %cst_4 : f32 to vector<4x1xf32>
    %11 = arith.mulf %9, %10 : vector<4x1xf32>
    %cst_5 = arith.constant dense<0.000000e+00> : vector<4xf32>
    %12 = vector.multi_reduction <add>, %7, %cst_5 [1] : vector<4x256xf32> to vector<4xf32>
    %13 = vector.shape_cast %12 : vector<4xf32> to vector<4x1xf32>
    %cst_6 = arith.constant 0.001953125 : f32
    %14 = vector.broadcast %cst_6 : f32 to vector<4x1xf32>
    %15 = arith.mulf %13, %14 : vector<4x1xf32>
    %16 = arith.mulf %11, %11 : vector<4x1xf32>
    %17 = arith.subf %15, %16 : vector<4x1xf32>
    %cst_7 = arith.constant 0.000000e+00 : f32
    %18 = vector.broadcast %cst_7 : f32 to vector<4x1xf32>
    %19 = arith.maximumf %17, %18 : vector<4x1xf32>
    %cst_8 = arith.constant 9.99999974E-6 : f32
    %20 = vector.broadcast %cst_8 : f32 to vector<4x1xf32>
    %21 = arith.addf %19, %20 : vector<4x1xf32>
    %22 = math.rsqrt %21 : vector<4x1xf32>
    %c0_9 = arith.constant 0 : index
    %23 = memref.load %arg1[%c0_9] : memref<2xi32, #tpu.memory_space<smem>>
    %24 = arith.index_cast %23 : i32 to index
    %c0_10 = arith.constant 0 : index
    %c0_11 = arith.constant 0 : index
    %25 = vector.load %arg3[%24, %c0_10, %c0_11] : memref<10x4x2xf32, #tpu.memory_space<vmem>>, vector<1x4x2xf32>
    %26 = vector.shape_cast %25 : vector<1x4x2xf32> to vector<4x2xf32>
    %27 = vector.extract_strided_slice %26 {offsets = [0, 0], sizes = [4, 1], strides = [1, 1]} : vector<4x2xf32> to vector<4x1xf32>
    %28 = arith.mulf %27, %22 : vector<4x1xf32>
    %29 = vector.extract_strided_slice %26 {offsets = [0, 1], sizes = [4, 1], strides = [1, 1]} : vector<4x2xf32> to vector<4x1xf32>
    %30 = arith.mulf %11, %28 : vector<4x1xf32>
    %31 = arith.subf %29, %30 : vector<4x1xf32>
    %c0_12 = arith.constant 0 : index
    %c0_13 = arith.constant 0 : index
    %c0_14 = arith.constant 0 : index
    %32 = vector.load %arg2[%c0_12, %c0_13, %c0_14] : memref<2x4x256xf32, #tpu.memory_space<vmem>>, vector<1x4x256xf32>
    %33 = vector.shape_cast %32 : vector<1x4x256xf32> to vector<4x256xf32>
    %34 = vector.broadcast %28 : vector<4x1xf32> to vector<4x256xf32>
    %35 = arith.mulf %33, %34 : vector<4x256xf32>
    %36 = vector.broadcast %31 : vector<4x1xf32> to vector<4x256xf32>
    %37 = arith.addf %35, %36 : vector<4x256xf32>
    %c0_15 = arith.constant 0 : index
    %c0_16 = arith.constant 0 : index
    %c0_17 = arith.constant 0 : index
    %38 = vector.load %arg4[%c0_15, %c0_16, %c0_17] : memref<2x4x256xf32, #tpu.memory_space<vmem>>, vector<1x4x256xf32>
    %39 = vector.shape_cast %38 : vector<1x4x256xf32> to vector<4x256xf32>
    %40 = vector.shape_cast %37 : vector<4x256xf32> to vector<1x4x256xf32>
    tpu.vector_store %arg4[%c0_15, %c0_16, %c0_17], %40 {strides = array<i32>} : memref<2x4x256xf32, #tpu.memory_space<vmem>>, vector<1x4x256xf32>,
    %c1_18 = arith.constant 1 : index
    %41 = memref.load %arg1[%c1_18] : memref<2xi32, #tpu.memory_space<smem>>
    %42 = arith.index_cast %41 : i32 to index
    %c0_19 = arith.constant 0 : index
    %c0_20 = arith.constant 0 : index
    %43 = vector.load %arg3[%42, %c0_19, %c0_20] : memref<10x4x2xf32, #tpu.memory_space<vmem>>, vector<1x4x2xf32>
    %44 = vector.shape_cast %43 : vector<1x4x2xf32> to vector<4x2xf32>
    %45 = vector.extract_strided_slice %44 {offsets = [0, 0], sizes = [4, 1], strides = [1, 1]} : vector<4x2xf32> to vector<4x1xf32>
    %46 = arith.mulf %45, %22 : vector<4x1xf32>
    %47 = vector.extract_strided_slice %44 {offsets = [0, 1], sizes = [4, 1], strides = [1, 1]} : vector<4x2xf32> to vector<4x1xf32>
    %48 = arith.mulf %11, %46 : vector<4x1xf32>
    %49 = arith.subf %47, %48 : vector<4x1xf32>
    %c1_21 = arith.constant 1 : index
    %c0_22 = arith.constant 0 : index
    %c0_23 = arith.constant 0 : index
    %50 = vector.load %arg2[%c1_21, %c0_22, %c0_23] : memref<2x4x256xf32, #tpu.memory_space<vmem>>, vector<1x4x256xf32>
    %51 = vector.shape_cast %50 : vector<1x4x256xf32> to vector<4x256xf32>
    %52 = vector.broadcast %46 : vector<4x1xf32> to vector<4x256xf32>
    %53 = arith.mulf %51, %52 : vector<4x256xf32>
    %54 = vector.broadcast %49 : vector<4x1xf32> to vector<4x256xf32>
    %55 = arith.addf %53, %54 : vector<4x256xf32>
    %c1_24 = arith.constant 1 : index
    %c0_25 = arith.constant 0 : index
    %c0_26 = arith.constant 0 : index
    %56 = vector.load %arg4[%c1_24, %c0_25, %c0_26] : memref<2x4x256xf32, #tpu.memory_space<vmem>>, vector<1x4x256xf32>
    %57 = vector.shape_cast %56 : vector<1x4x256xf32> to vector<4x256xf32>
    %58 = vector.shape_cast %55 : vector<4x256xf32> to vector<1x4x256xf32>
    tpu.vector_store %arg4[%c1_24, %c0_25, %c0_26], %58 {strides = array<i32>} : memref<2x4x256xf32, #tpu.memory_space<vmem>>, vector<1x4x256xf32>,
    return
  }
  func.func @transform_0(%arg0: i32, %arg1: memref<2xi32, #tpu.memory_space<smem>>) -> (i32, i32, i32) {
    %c0_i32 = arith.constant 0 : i32
    %c0_i32_0 = arith.constant 0 : i32
    %c0_i32_1 = arith.constant 0 : i32
    return %c0_i32, %arg0, %c0_i32_0 : i32, i32, i32
  }
  func.func @transform_1(%arg0: i32, %arg1: memref<2xi32, #tpu.memory_space<smem>>) -> (i32, i32, i32) {
    %c0_i32 = arith.constant 0 : i32
    %c0_i32_0 = arith.constant 0 : i32
    %c0_i32_1 = arith.constant 0 : i32
    return %c0_i32, %arg0, %c0_i32_0 : i32, i32, i32
  }
  func.func @transform_2(%arg0: i32, %arg1: memref<2xi32, #tpu.memory_space<smem>>) -> (i32, i32, i32) {
    %c0_i32 = arith.constant 0 : i32
    %c0_i32_0 = arith.constant 0 : i32
    %c0_i32_1 = arith.constant 0 : i32
    return %c0_i32, %arg0, %c0_i32_0 : i32, i32, i32
  }
}

</mosaic_0001>

<bundles_post_ra>
// kernel: tpu_custom_call.1
= control target key start
LH: loop header
LB: loop body
LE: loop exit
PB: predicated region body
PF: predicated region fallthrough
CT: control target
= control target key end

     0   :  { %s213_s15 = smov [#allocation3]   ;;  %s271_s0 = inlined_call_operand.vmem [shape: s32[2], index: 0, kind: input, shape index: {}]   ;;  %s272_s1 = inlined_call_operand.vmem [shape: f32[2,4,256], index: 1, kind: input, shape index: {}]   ;;  %s273_s2 = inlined_call_operand.vmem [shape: f32[10,4,2], index: 2, kind: input, shape index: {}]   ;;  %s274_s3 = inlined_call_operand.hbm [shape: f32[2,4,256], index: 3, kind: output, shape index: {}]  }
   0x1   :  { %s9_s14 = sshll.u32 %s271_s0, 4  ;;  %s10_s14 = int_to_ptr.vmem [resolvable:$true] %s9_s14 }
   0x2   :  { %12 = dma.vmem_to_smem %s10_s14, 16, %s213_s15, [#allocation2] }
   0x3   :  { %209 = dma.done.wait [#allocation2], 16 }
   0x4   :  { %210 = vsyncadd [#allocation2], 4294967280 }
   0x5   :  { %15 = sfence }
   0x6   :  { %v247_v0 = vld [vmem:[%s272_s1] sm:$0xff]  ;;  %v252_v1 = vld [vmem:[%s272_s1 + $0x8] sm:$0xff] }
   0x7   :  { %16 = vsyncpa [#allocation5], 0  ;;  %v25_v2 = vadd.f32 %v252_v1, %v247_v0  ;;  %v26_v3 = vmul.f32 %v252_v1, %v252_v1  ;;  %v22_v4 = vmul.f32 %v247_v0, %v247_v0  ;;  %vm34_vm0 = vcmask 1043456   ;;  %s67_s0 = sld [smem:[#allocation3]]  ;;  %s215_s28 = smov 1  }
   0x8   :  { %v214_v16 = vmov 0   ;;  %s157_s1 = sld [smem:[#allocation3 + $0x1]]  ;;  %v216_v38 = vmov 1   ;;  %v217_v43 = vmov 839922192   ;;  %s139_s5 = sshll.u32 %s274_s3, 4  ;;  %s140_s5 = int_to_ptr.hbm [resolvable:$true] %s139_s5 }
   0x9   :  { %29 = vst [vmem:[#allocation1] ss:$2 sm:$0xff] %v25_v2  ;;  %v27_v5 = vadd.f32 %v26_v3, %v22_v4  ;;  %168 = vset.pattern.permute.xlu2 %v214_v16  ;;  %169 = vset.pattern.permute.xlu0 %v216_v38  ;;  %v83_v44 = vunpack.c.l.s4 %v217_v43  ;;  %s219_s6 = smov 128   ;;  %s220_s7 = smov 8  }
   0xa   :  { %170 = vset.pattern.permute.xlu1 %v216_v38 }
   0xb   :  { %v84_v46 = vunpack.c.0.s8 %v83_v44 }
   0xd   :  { %s156_s20 = sshll.u32 %s67_s0, 2 }
   0xe   :  { %s69_s23 = scalar_lea.vmem %s273_s2, %s156_s20  ;;  %s158_s24 = sshll.u32 %s157_s1, 2 }
   0xf   :  { %v70_v31 = vld [vmem:[%s69_s23] sm:$0xf]  ;;  %s101_s27 = scalar_lea.vmem %s273_s2, %s158_s24  ;;  %s218_s2 = smov [#allocation4]  }
  0x10   :  { %v30_v6 = vld.sshfl [vmem:[#allocation1] sm:$0xff pattern:$0x75316420]  ;;  %v31_v7 = vld.sshfl [vmem:[#allocation1 + $0x8] sm:$0xff pattern:$0x75316420] }
  0x11   :  { %v35_v8 = vsel %vm34_vm0, %v30_v6, 0.0  ;;  %v36_v9 = vsel %vm34_vm0, %v31_v7, 0.0  ;;  %42 = vst [vmem:[#allocation1] ss:$2 sm:$0xff] %v27_v5  ;;  %v102_v35 = vld [vmem:[%s101_s27] sm:$0xf] }
  0x12   :  { %v37_v10 = vadd.f32 %v36_v9, %v35_v8  ;;  %s137_s29 = sshll.u32 %s218_s2, 4  ;;  %s138_s29 = int_to_ptr.vmem [resolvable:$true] %s137_s29 }
  0x14   :  { %38 = vadd.xlane.f32.xlu0 %v37_v10 }
  0x18   :  { %v43_v11 = vld.sshfl [vmem:[#allocation1] sm:$0xff pattern:$0x75316420]  ;;  %v44_v12 = vld.sshfl [vmem:[#allocation1 + $0x8] sm:$0xff pattern:$0x75316420] }
  0x19   :  { %v47_v13 = vsel %vm34_vm0, %v43_v11, 0.0  ;;  %v48_v14 = vsel %vm34_vm0, %v44_v12, 0.0 }
  0x1a   :  { %v49_v15 = vadd.f32 %v48_v14, %v47_v13 }
  0x1c   :  { %50 = vadd.xlane.f32.xlu0 %v49_v15 }
  0x87   :  { %v39_v17 = vpop.xlane.xlu0 %38 }
  0x88   :  { %v40_v18 = vmul.f32 0.001953125, %v39_v17 }
  0x8a   :  { %v53_v20 = vmul.f32 %v40_v18, %v40_v18 }
  0x8f   :  { %v51_v19 = vpop.xlane.xlu0 %50 }
  0x90   :  { %v52_v21 = vmul.f32 0.001953125, %v51_v19 }
  0x92   :  { %v54_v22 = vsub.f32 %v52_v21, %v53_v20 }
  0x94   :  { %v55_v23 = vmax.f32 %v54_v22, 0.0 }
  0x96   :  { %v56_v24 = vadd.f32 1e-05, %v55_v23 }
  0x98   :  { %171 = vrsqrt.f32 %v56_v24  ;;  %vm63_vm2 = vweird.f32 %v56_v24 }
  0x9e   :  { %v172_v25 = vpop.eup %171 }
  0x9f   :  { %v58_v26 = vmul.f32 %v172_v25, %v56_v24  ;;  %vm64_vm1 = vweird.f32 %v172_v25 }
  0xa0   :  { %vm65_vm3 = vmor %vm63_vm2, %vm64_vm1 }
  0xa1   :  { %v59_v27 = vmul.f32 %v172_v25, %v58_v26 }
  0xa3   :  { %v60_v28 = vmul.f32 0.5, %v59_v27 }
  0xa5   :  { %v61_v29 = vsub.f32 1.5, %v60_v28 }
  0xa7   :  { %v62_v30 = vmul.f32 %v172_v25, %v61_v29 }
  0xa9   :  { %v66_v32 = vsel %vm65_vm3, %v172_v25, %v62_v30 }
  0xaa   :  { %v71_v33 = vmul.f32 %v70_v31, %v66_v32  ;;  %v103_v36 = vmul.f32 %v102_v35, %v66_v32 }
  0xac   :  { %80 = vperm.xlu2 %168, %v71_v33   ;;  %v72_v34 = vmul.f32 %v71_v33, %v40_v18  ;;  %v104_v37 = vmul.f32 %v103_v36, %v40_v18 }
  0xae   :  { %74 = vrot.lane.b32.xlu1 %v72_v34, %s215_s28 }
  0xb4   :  { %113 = vperm.xlu2 %168, %v103_v36  }
  0xb6   :  { %106 = vrot.lane.b32.xlu1 %v104_v37, %s215_s28 }
 0x106   :  { %v81_v45 = vpop.permute.xlu2 %80 }
 0x107   :  { %v85_v47 = vperm.slane %v81_v45, %v84_v46 }
 0x109   :  { %v87_v49 = vmul.f32 %v85_v47, %v247_v0 }
 0x10e   :  { %v114_v51 = vpop.permute.xlu2 %113 }
 0x10f   :  { %v118_v53 = vperm.slane %v114_v51, %v84_v46 }
 0x111   :  { %v120_v55 = vmul.f32 %v252_v1, %v118_v53 }
 0x120   :  { %v75_v39 = vpop.permute.xlu1 %74 }
 0x121   :  { %v77_v40 = vsub.f32 %v70_v31, %v75_v39 }
 0x123   :  { %90 = vperm.xlu0 %169, %v77_v40  }
 0x128   :  { %v107_v41 = vpop.permute.xlu1 %106 }
 0x129   :  { %v109_v42 = vsub.f32 %v102_v35, %v107_v41 }
 0x12b   :  { %123 = vperm.xlu1 %170, %v109_v42  }
 0x195   :  { %v91_v48 = vpop.permute.xlu0 %90 }
 0x196   :  { %v95_v50 = vperm.slane %v91_v48, %v84_v46 }
 0x198   :  { %v97_v52 = vadd.f32 %v95_v50, %v87_v49 }
 0x19a   :  { %98 = vst [vmem:[#allocation4] sm:$0xff] %v97_v52 }
 0x19d   :  { %v124_v54 = vpop.permute.xlu1 %123 }
 0x19e   :  { %v128_v56 = vperm.slane %v124_v54, %v84_v46 }
 0x1a0   :  { %v130_v57 = vadd.f32 %v128_v56, %v120_v55 }
 0x1a2   :  { %132 = vst [vmem:[#allocation4 + $0x8] sm:$0xff] %v130_v57 }
 0x1a3   :  { %145 = dma.vmem_to_hbm [thread:$0]  %s138_s29, 256, %s140_s5, [#allocation5], %s219_s6, %s219_s6, %s220_s7  }
 0x1a4   :  { %211 = dma.done.wait [#allocation5], 256  }
 0x1a5   :  { %212 = vsyncadd [#allocation5], 4294967040 }
 0x1a6   :  { %150 = vsyncpa [#allocation5], 1 }

</bundles_post_ra>
